<compile_context>
chip_gen: v7x
topology: tpu7x:2x2x1
jax: 0.10.0
libtpu: 0.0.40
codegen_flags: <defaults>
</compile_context>

<pallas_src>
import functools

import jax
import jax.numpy as jnp
from jax import lax
from jax.experimental import pallas as pl
from jax.experimental.pallas import tpu as pltpu


def _lstm_recurrence_kernel(pg_ref, whh_ref, out_ref, h_out_ref, c_out_ref,
                            h_scr, c_scr, *, hid_dim, t_chunk):
    """Recurrent half of one LSTM layer.

    Grid axis 0 walks chunks of `t_chunk` timesteps (sequential).  The input
    projection has been hoisted out of the recurrence; `pg_ref` holds the
    per-timestep pre-gates (X @ W_ih^T + b_ih + b_hh).  Only h @ W_hh^T and
    the gate elementwise math remain inside the loop.
    """
    step = pl.program_id(0)

    @pl.when(step == 0)
    def _():
        h_scr[...] = jnp.zeros_like(h_scr)
        c_scr[...] = jnp.zeros_like(c_scr)

    whh = whh_ref[...]          # (H, 4H), loop-invariant: load once per chunk
    H = hid_dim

    def body(i, carry):
        h, c = carry
        gates = pg_ref[i] + jnp.dot(h.astype(whh.dtype), whh,
                                    preferred_element_type=jnp.float32)  # (Bp, 4H)
        # PyTorch gate order: i, f, g, o
        i_g = jax.nn.sigmoid(gates[:, 0 * H:1 * H])
        f_g = jax.nn.sigmoid(gates[:, 1 * H:2 * H])
        g_g = jnp.tanh(gates[:, 2 * H:3 * H])
        o_g = jax.nn.sigmoid(gates[:, 3 * H:4 * H])
        c_new = f_g * c + i_g * g_g
        h_new = o_g * jnp.tanh(c_new)
        out_ref[i] = h_new                       # per-step output (next layer input)
        return h_new, c_new

    h_fin, c_fin = lax.fori_loop(0, t_chunk, body,
                                 (h_scr[...], c_scr[...]), unroll=True)
    h_scr[...] = h_fin
    c_scr[...] = c_fin

    @pl.when(step == pl.num_programs(0) - 1)
    def _():
        h_out_ref[...] = h_fin
        c_out_ref[...] = c_fin


def _choose_t_chunk(T, max_chunk=32):
    """Largest divisor of T that is <= max_chunk (timesteps per grid step)."""
    for c in range(min(T, max_chunk), 0, -1):
        if T % c == 0:
            return c
    return 1


def lstm_layer_pallas(x, w_ih_t, w_hh_t, b, *, t_chunk):
    """Run one full LSTM layer over the sequence.

    x      : (T, Bp, E) float32   (Bp = batch padded to a sublane multiple)
    w_ih_t : (E, 4H)              (transposed PyTorch weight_ih)
    w_hh_t : (H, 4H)              (transposed PyTorch weight_hh)
    b      : (1, 4H)  float32     (b_ih + b_hh)
    returns (out_seq (T,Bp,H), h_final (Bp,H), c_final (Bp,H))
    """
    T, Bp, E = x.shape
    H = w_hh_t.shape[0]
    G = 4 * H

    # Hoisted input projection: one (T*Bp, E) x (E, 4H) matmul for the whole
    # sequence (plain XLA -> MXU-friendly M = T*Bp), bias folded in here.
    pre_gates = jnp.dot(x.reshape(T * Bp, E).astype(w_ih_t.dtype), w_ih_t,
                        preferred_element_type=jnp.float32)
    pre_gates = pre_gates.reshape(T, Bp, G) + b           # (T, Bp, 4H) f32

    n_chunks = T // t_chunk
    kernel = functools.partial(_lstm_recurrence_kernel, hid_dim=H,
                               t_chunk=t_chunk)

    out_seq, h_fin, c_fin = pl.pallas_call(
        kernel,
        out_shape=(jax.ShapeDtypeStruct((T, Bp, H), jnp.float32),
                   jax.ShapeDtypeStruct((Bp, H), jnp.float32),
                   jax.ShapeDtypeStruct((Bp, H), jnp.float32)),
        grid_spec=pltpu.PrefetchScalarGridSpec(
            num_scalar_prefetch=0,
            grid=(n_chunks,),
            in_specs=[
                pl.BlockSpec((t_chunk, Bp, G), lambda s: (s, 0, 0)),
                pl.BlockSpec((H, G), lambda s: (0, 0)),
            ],
            out_specs=[
                pl.BlockSpec((t_chunk, Bp, H), lambda s: (s, 0, 0)),
                pl.BlockSpec((Bp, H), lambda s: (0, 0)),
                pl.BlockSpec((Bp, H), lambda s: (0, 0)),
            ],
            scratch_shapes=[pltpu.VMEM((Bp, H), jnp.float32),
                            pltpu.VMEM((Bp, H), jnp.float32)]),
        compiler_params=pltpu.CompilerParams(
            dimension_semantics=("arbitrary",)),   # time recurrence is sequential
    )(pre_gates, w_hh_t)
    return out_seq, h_fin, c_fin


class Encoder:
    """JAX/Pallas port of the PyTorch Encoder (inference semantics)."""

    def __init__(self, pretrained_vectors, n_layers, dropout, key,
                 matmul_dtype=jnp.float32):
        # matmul_dtype=jnp.bfloat16 is recommended on v6e/v7x (weights-only;
        # gate elementwise math and accumulation stay f32).
        self.vectors = jnp.asarray(pretrained_vectors, jnp.float32)  # (V, D)
        self.emb_dim = self.vectors.shape[1] * 2
        self.hid_dim = self.emb_dim
        self.n_layers = n_layers
        self.dropout = dropout  # TODO(synk): training-mode inter-layer dropout not applied (inference forward).

        H = self.hid_dim
        k = 1.0 / jnp.sqrt(jnp.float32(H))
        self.layers = []
        for layer in range(n_layers):
            in_dim = self.emb_dim if layer == 0 else H
            key, k1, k2, k3, k4 = jax.random.split(key, 5)
            w_ih = jax.random.uniform(k1, (4 * H, in_dim), jnp.float32, -k, k)
            w_hh = jax.random.uniform(k2, (4 * H, H), jnp.float32, -k, k)
            b_ih = jax.random.uniform(k3, (4 * H,), jnp.float32, -k, k)
            b_hh = jax.random.uniform(k4, (4 * H,), jnp.float32, -k, k)
            self.layers.append((w_ih.T.astype(matmul_dtype),
                                w_hh.T.astype(matmul_dtype),
                                (b_ih + b_hh)[None, :].astype(jnp.float32)))

    def __call__(self, src):
        # src : (2, T, B) int32
        src = jnp.asarray(src, jnp.int32)
        text_embedded = jnp.take(self.vectors, src[0], axis=0)        # (T, B, D)
        head_text_embedded = jnp.take(self.vectors, src[1], axis=0)   # (T, B, D)
        embedded = jnp.concatenate((text_embedded, head_text_embedded), axis=2)

        T, B, _ = embedded.shape
        # Pad batch to a sublane multiple (>= 8): vreg-dense state/gate tiles,
        # unmasked stores.  Padded rows are independent and sliced off below.
        Bp = max(8, ((B + 7) // 8) * 8)
        if Bp != B:
            embedded = jnp.pad(embedded, ((0, 0), (0, Bp - B), (0, 0)))

        t_chunk = _choose_t_chunk(T)

        x = embedded
        hiddens, cells = [], []
        for (w_ih_t, w_hh_t, b) in self.layers:
            x, h_fin, c_fin = lstm_layer_pallas(x, w_ih_t, w_hh_t, b,
                                                t_chunk=t_chunk)
            hiddens.append(h_fin)
            cells.append(c_fin)

        hidden = jnp.stack(hiddens, axis=0)[:, :B, :]   # (n_layers, B, H)
        cell = jnp.stack(cells, axis=0)[:, :B, :]       # (n_layers, B, H)
        return hidden, cell


if __name__ == "__main__":
    key = jax.random.PRNGKey(0)
    k_vec, k_src, k_enc = jax.random.split(key, 3)

    vocab, emb_d = 20, 16          # emb_dim = hid_dim = 32, 4H = 128
    T, B = 8, 2
    n_layers = 2

    pretrained = jax.random.normal(k_vec, (vocab, emb_d), jnp.float32)
    src = jax.random.randint(k_src, (2, T, B), 0, vocab, dtype=jnp.int32)

    enc = Encoder(pretrained, n_layers=n_layers, dropout=0.0, key=k_enc)
    hidden, cell = enc(src)
    jax.block_until_ready((hidden, cell))

    assert hidden.shape == (n_layers, B, 2 * emb_d)
    assert cell.shape == (n_layers, B, 2 * emb_d)
    print("KERNEL_OK")
</pallas_src>

<mosaic_0001>
module attributes {stable_mosaic.version = 11 : i64} {
  func.func @_lstm_recurrence_kernel(%arg0: i32, %arg1: memref<8x8x128xf32, #tpu.memory_space<vmem>>, %arg2: memref<32x128xf32, #tpu.memory_space<vmem>>, %arg3: memref<8x8x32xf32, #tpu.memory_space<vmem>>, %arg4: memref<8x32xf32, #tpu.memory_space<vmem>>, %arg5: memref<8x32xf32, #tpu.memory_space<vmem>>, %arg6: memref<8x32xf32, #tpu.memory_space<vmem>>, %arg7: memref<8x32xf32, #tpu.memory_space<vmem>>) attributes {dimension_semantics = [#tpu.dimension_semantics<arbitrary>], iteration_bounds = array<i64: 1>, scalar_prefetch = 0 : i64, scratch_operands = 2 : i64, tpu.core_type = #tpu.core_type<tc>, window_params = [{transform_indices = @transform_0, window_bounds = array<i64: 8, 8, 128>}, {pipeline_mode = #tpu.pipeline_mode<synchronous>, transform_indices = @transform_1, window_bounds = array<i64: 32, 128>}, {transform_indices = @transform_2, window_bounds = array<i64: 8, 8, 32>}, {pipeline_mode = #tpu.pipeline_mode<synchronous>, transform_indices = @transform_3, window_bounds = array<i64: 8, 32>}, {pipeline_mode = #tpu.pipeline_mode<synchronous>, transform_indices = @transform_4, window_bounds = array<i64: 8, 32>}]} {
    %c0_i32 = arith.constant 0 : i32
    %0 = arith.cmpi eq, %arg0, %c0_i32 : i32
    %1 = arith.extui %0 : i1 to i32
    %c0_i32_0 = arith.constant 0 : i32
    %2 = arith.cmpi ne, %1, %c0_i32_0 : i32
    scf.if %2 {
      %cst_76 = arith.constant 0.000000e+00 : f32
      %283 = vector.broadcast %cst_76 : f32 to vector<8x32xf32>
      %c0_77 = arith.constant 0 : index
      %c0_78 = arith.constant 0 : index
      %284 = vector.load %arg6[%c0_77, %c0_78] : memref<8x32xf32, #tpu.memory_space<vmem>>, vector<8x32xf32>
      tpu.vector_store %arg6[%c0_77, %c0_78], %283 {strides = array<i32>} : memref<8x32xf32, #tpu.memory_space<vmem>>, vector<8x32xf32>,
      %cst_79 = arith.constant 0.000000e+00 : f32
      %285 = vector.broadcast %cst_79 : f32 to vector<8x32xf32>
      %c0_80 = arith.constant 0 : index
      %c0_81 = arith.constant 0 : index
      %286 = vector.load %arg7[%c0_80, %c0_81] : memref<8x32xf32, #tpu.memory_space<vmem>>, vector<8x32xf32>
      tpu.vector_store %arg7[%c0_80, %c0_81], %285 {strides = array<i32>} : memref<8x32xf32, #tpu.memory_space<vmem>>, vector<8x32xf32>,
    } else {
    }
    %c0 = arith.constant 0 : index
    %c0_1 = arith.constant 0 : index
    %3 = vector.load %arg2[%c0, %c0_1] : memref<32x128xf32, #tpu.memory_space<vmem>>, vector<32x128xf32>
    %c0_2 = arith.constant 0 : index
    %c0_3 = arith.constant 0 : index
    %4 = vector.load %arg6[%c0_2, %c0_3] : memref<8x32xf32, #tpu.memory_space<vmem>>, vector<8x32xf32>
    %c0_4 = arith.constant 0 : index
    %c0_5 = arith.constant 0 : index
    %5 = vector.load %arg7[%c0_4, %c0_5] : memref<8x32xf32, #tpu.memory_space<vmem>>, vector<8x32xf32>
    %c0_i32_6 = arith.constant 0 : i32
    %6 = arith.index_cast %c0_i32_6 : i32 to index
    %c0_7 = arith.constant 0 : index
    %c0_8 = arith.constant 0 : index
    %7 = vector.load %arg1[%6, %c0_7, %c0_8] : memref<8x8x128xf32, #tpu.memory_space<vmem>>, vector<1x8x128xf32>
    %8 = vector.shape_cast %7 : vector<1x8x128xf32> to vector<8x128xf32>
    %cst = arith.constant dense<0.000000e+00> : vector<8x128xf32>
    %9 = tpu.matmul %4, %3, %cst {dimension_numbers = #tpu.dot_dimension_numbers<[1], [0], [0], [1], [0, 0, 1, 1], [], []>} : vector<8x32xf32>, vector<32x128xf32>, vector<8x128xf32> -> vector<8x128xf32>
    %10 = arith.addf %8, %9 : vector<8x128xf32>
    %11 = vector.extract_strided_slice %10 {offsets = [0, 0], sizes = [8, 32], strides = [1, 1]} : vector<8x128xf32> to vector<8x32xf32>
    %12 = arith.negf %11 : vector<8x32xf32>
    %13 = math.exp %12 : vector<8x32xf32>
    %cst_9 = arith.constant 1.000000e+00 : f32
    %14 = vector.broadcast %cst_9 : f32 to vector<8x32xf32>
    %15 = arith.addf %14, %13 : vector<8x32xf32>
    %16 = arith.divf %14, %15 : vector<8x32xf32>
    %17 = vector.extract_strided_slice %10 {offsets = [0, 32], sizes = [8, 32], strides = [1, 1]} : vector<8x128xf32> to vector<8x32xf32>
    %18 = arith.negf %17 : vector<8x32xf32>
    %19 = math.exp %18 : vector<8x32xf32>
    %cst_10 = arith.constant 1.000000e+00 : f32
    %20 = vector.broadcast %cst_10 : f32 to vector<8x32xf32>
    %21 = arith.addf %20, %19 : vector<8x32xf32>
    %22 = arith.divf %20, %21 : vector<8x32xf32>
    %23 = vector.extract_strided_slice %10 {offsets = [0, 64], sizes = [8, 32], strides = [1, 1]} : vector<8x128xf32> to vector<8x32xf32>
    %24 = math.tanh %23 : vector<8x32xf32>
    %25 = vector.extract_strided_slice %10 {offsets = [0, 96], sizes = [8, 32], strides = [1, 1]} : vector<8x128xf32> to vector<8x32xf32>
    %26 = arith.negf %25 : vector<8x32xf32>
    %27 = math.exp %26 : vector<8x32xf32>
    %cst_11 = arith.constant 1.000000e+00 : f32
    %28 = vector.broadcast %cst_11 : f32 to vector<8x32xf32>
    %29 = arith.addf %28, %27 : vector<8x32xf32>
    %30 = arith.divf %28, %29 : vector<8x32xf32>
    %31 = arith.mulf %22, %5 : vector<8x32xf32>
    %32 = arith.mulf %16, %24 : vector<8x32xf32>
    %33 = arith.addf %31, %32 : vector<8x32xf32>
    %34 = math.tanh %33 : vector<8x32xf32>
    %35 = arith.mulf %30, %34 : vector<8x32xf32>
    %36 = arith.index_cast %c0_i32_6 : i32 to index
    %c0_12 = arith.constant 0 : index
    %c0_13 = arith.constant 0 : index
    %37 = vector.load %arg3[%36, %c0_12, %c0_13] : memref<8x8x32xf32, #tpu.memory_space<vmem>>, vector<1x8x32xf32>
    %38 = vector.shape_cast %37 : vector<1x8x32xf32> to vector<8x32xf32>
    %39 = vector.shape_cast %35 : vector<8x32xf32> to vector<1x8x32xf32>
    tpu.vector_store %arg3[%36, %c0_12, %c0_13], %39 {strides = array<i32>} : memref<8x8x32xf32, #tpu.memory_space<vmem>>, vector<1x8x32xf32>,
    %c1_i32 = arith.constant 1 : i32
    %40 = arith.index_cast %c1_i32 : i32 to index
    %c0_14 = arith.constant 0 : index
    %c0_15 = arith.constant 0 : index
    %41 = vector.load %arg1[%40, %c0_14, %c0_15] : memref<8x8x128xf32, #tpu.memory_space<vmem>>, vector<1x8x128xf32>
    %42 = vector.shape_cast %41 : vector<1x8x128xf32> to vector<8x128xf32>
    %cst_16 = arith.constant dense<0.000000e+00> : vector<8x128xf32>
    %43 = tpu.matmul %35, %3, %cst_16 {dimension_numbers = #tpu.dot_dimension_numbers<[1], [0], [0], [1], [0, 0, 1, 1], [], []>} : vector<8x32xf32>, vector<32x128xf32>, vector<8x128xf32> -> vector<8x128xf32>
    %44 = arith.addf %42, %43 : vector<8x128xf32>
    %45 = vector.extract_strided_slice %44 {offsets = [0, 0], sizes = [8, 32], strides = [1, 1]} : vector<8x128xf32> to vector<8x32xf32>
    %46 = arith.negf %45 : vector<8x32xf32>
    %47 = math.exp %46 : vector<8x32xf32>
    %cst_17 = arith.constant 1.000000e+00 : f32
    %48 = vector.broadcast %cst_17 : f32 to vector<8x32xf32>
    %49 = arith.addf %48, %47 : vector<8x32xf32>
    %50 = arith.divf %48, %49 : vector<8x32xf32>
    %51 = vector.extract_strided_slice %44 {offsets = [0, 32], sizes = [8, 32], strides = [1, 1]} : vector<8x128xf32> to vector<8x32xf32>
    %52 = arith.negf %51 : vector<8x32xf32>
    %53 = math.exp %52 : vector<8x32xf32>
    %cst_18 = arith.constant 1.000000e+00 : f32
    %54 = vector.broadcast %cst_18 : f32 to vector<8x32xf32>
    %55 = arith.addf %54, %53 : vector<8x32xf32>
    %56 = arith.divf %54, %55 : vector<8x32xf32>
    %57 = vector.extract_strided_slice %44 {offsets = [0, 64], sizes = [8, 32], strides = [1, 1]} : vector<8x128xf32> to vector<8x32xf32>
    %58 = math.tanh %57 : vector<8x32xf32>
    %59 = vector.extract_strided_slice %44 {offsets = [0, 96], sizes = [8, 32], strides = [1, 1]} : vector<8x128xf32> to vector<8x32xf32>
    %60 = arith.negf %59 : vector<8x32xf32>
    %61 = math.exp %60 : vector<8x32xf32>
    %cst_19 = arith.constant 1.000000e+00 : f32
    %62 = vector.broadcast %cst_19 : f32 to vector<8x32xf32>
    %63 = arith.addf %62, %61 : vector<8x32xf32>
    %64 = arith.divf %62, %63 : vector<8x32xf32>
    %65 = arith.mulf %56, %33 : vector<8x32xf32>
    %66 = arith.mulf %50, %58 : vector<8x32xf32>
    %67 = arith.addf %65, %66 : vector<8x32xf32>
    %68 = math.tanh %67 : vector<8x32xf32>
    %69 = arith.mulf %64, %68 : vector<8x32xf32>
    %70 = arith.index_cast %c1_i32 : i32 to index
    %c0_20 = arith.constant 0 : index
    %c0_21 = arith.constant 0 : index
    %71 = vector.load %arg3[%70, %c0_20, %c0_21] : memref<8x8x32xf32, #tpu.memory_space<vmem>>, vector<1x8x32xf32>
    %72 = vector.shape_cast %71 : vector<1x8x32xf32> to vector<8x32xf32>
    %73 = vector.shape_cast %69 : vector<8x32xf32> to vector<1x8x32xf32>
    tpu.vector_store %arg3[%70, %c0_20, %c0_21], %73 {strides = array<i32>} : memref<8x8x32xf32, #tpu.memory_space<vmem>>, vector<1x8x32xf32>,
    %c2_i32 = arith.constant 2 : i32
    %74 = arith.index_cast %c2_i32 : i32 to index
    %c0_22 = arith.constant 0 : index
    %c0_23 = arith.constant 0 : index
    %75 = vector.load %arg1[%74, %c0_22, %c0_23] : memref<8x8x128xf32, #tpu.memory_space<vmem>>, vector<1x8x128xf32>
    %76 = vector.shape_cast %75 : vector<1x8x128xf32> to vector<8x128xf32>
    %cst_24 = arith.constant dense<0.000000e+00> : vector<8x128xf32>
    %77 = tpu.matmul %69, %3, %cst_24 {dimension_numbers = #tpu.dot_dimension_numbers<[1], [0], [0], [1], [0, 0, 1, 1], [], []>} : vector<8x32xf32>, vector<32x128xf32>, vector<8x128xf32> -> vector<8x128xf32>
    %78 = arith.addf %76, %77 : vector<8x128xf32>
    %79 = vector.extract_strided_slice %78 {offsets = [0, 0], sizes = [8, 32], strides = [1, 1]} : vector<8x128xf32> to vector<8x32xf32>
    %80 = arith.negf %79 : vector<8x32xf32>
    %81 = math.exp %80 : vector<8x32xf32>
    %cst_25 = arith.constant 1.000000e+00 : f32
    %82 = vector.broadcast %cst_25 : f32 to vector<8x32xf32>
    %83 = arith.addf %82, %81 : vector<8x32xf32>
    %84 = arith.divf %82, %83 : vector<8x32xf32>
    %85 = vector.extract_strided_slice %78 {offsets = [0, 32], sizes = [8, 32], strides = [1, 1]} : vector<8x128xf32> to vector<8x32xf32>
    %86 = arith.negf %85 : vector<8x32xf32>
    %87 = math.exp %86 : vector<8x32xf32>
    %cst_26 = arith.constant 1.000000e+00 : f32
    %88 = vector.broadcast %cst_26 : f32 to vector<8x32xf32>
    %89 = arith.addf %88, %87 : vector<8x32xf32>
    %90 = arith.divf %88, %89 : vector<8x32xf32>
    %91 = vector.extract_strided_slice %78 {offsets = [0, 64], sizes = [8, 32], strides = [1, 1]} : vector<8x128xf32> to vector<8x32xf32>
    %92 = math.tanh %91 : vector<8x32xf32>
    %93 = vector.extract_strided_slice %78 {offsets = [0, 96], sizes = [8, 32], strides = [1, 1]} : vector<8x128xf32> to vector<8x32xf32>
    %94 = arith.negf %93 : vector<8x32xf32>
    %95 = math.exp %94 : vector<8x32xf32>
    %cst_27 = arith.constant 1.000000e+00 : f32
    %96 = vector.broadcast %cst_27 : f32 to vector<8x32xf32>
    %97 = arith.addf %96, %95 : vector<8x32xf32>
    %98 = arith.divf %96, %97 : vector<8x32xf32>
    %99 = arith.mulf %90, %67 : vector<8x32xf32>
    %100 = arith.mulf %84, %92 : vector<8x32xf32>
    %101 = arith.addf %99, %100 : vector<8x32xf32>
    %102 = math.tanh %101 : vector<8x32xf32>
    %103 = arith.mulf %98, %102 : vector<8x32xf32>
    %104 = arith.index_cast %c2_i32 : i32 to index
    %c0_28 = arith.constant 0 : index
    %c0_29 = arith.constant 0 : index
    %105 = vector.load %arg3[%104, %c0_28, %c0_29] : memref<8x8x32xf32, #tpu.memory_space<vmem>>, vector<1x8x32xf32>
    %106 = vector.shape_cast %105 : vector<1x8x32xf32> to vector<8x32xf32>
    %107 = vector.shape_cast %103 : vector<8x32xf32> to vector<1x8x32xf32>
    tpu.vector_store %arg3[%104, %c0_28, %c0_29], %107 {strides = array<i32>} : memref<8x8x32xf32, #tpu.memory_space<vmem>>, vector<1x8x32xf32>,
    %c3_i32 = arith.constant 3 : i32
    %108 = arith.index_cast %c3_i32 : i32 to index
    %c0_30 = arith.constant 0 : index
    %c0_31 = arith.constant 0 : index
    %109 = vector.load %arg1[%108, %c0_30, %c0_31] : memref<8x8x128xf32, #tpu.memory_space<vmem>>, vector<1x8x128xf32>
    %110 = vector.shape_cast %109 : vector<1x8x128xf32> to vector<8x128xf32>
    %cst_32 = arith.constant dense<0.000000e+00> : vector<8x128xf32>
    %111 = tpu.matmul %103, %3, %cst_32 {dimension_numbers = #tpu.dot_dimension_numbers<[1], [0], [0], [1], [0, 0, 1, 1], [], []>} : vector<8x32xf32>, vector<32x128xf32>, vector<8x128xf32> -> vector<8x128xf32>
    %112 = arith.addf %110, %111 : vector<8x128xf32>
    %113 = vector.extract_strided_slice %112 {offsets = [0, 0], sizes = [8, 32], strides = [1, 1]} : vector<8x128xf32> to vector<8x32xf32>
    %114 = arith.negf %113 : vector<8x32xf32>
    %115 = math.exp %114 : vector<8x32xf32>
    %cst_33 = arith.constant 1.000000e+00 : f32
    %116 = vector.broadcast %cst_33 : f32 to vector<8x32xf32>
    %117 = arith.addf %116, %115 : vector<8x32xf32>
    %118 = arith.divf %116, %117 : vector<8x32xf32>
    %119 = vector.extract_strided_slice %112 {offsets = [0, 32], sizes = [8, 32], strides = [1, 1]} : vector<8x128xf32> to vector<8x32xf32>
    %120 = arith.negf %119 : vector<8x32xf32>
    %121 = math.exp %120 : vector<8x32xf32>
    %cst_34 = arith.constant 1.000000e+00 : f32
    %122 = vector.broadcast %cst_34 : f32 to vector<8x32xf32>
    %123 = arith.addf %122, %121 : vector<8x32xf32>
    %124 = arith.divf %122, %123 : vector<8x32xf32>
    %125 = vector.extract_strided_slice %112 {offsets = [0, 64], sizes = [8, 32], strides = [1, 1]} : vector<8x128xf32> to vector<8x32xf32>
    %126 = math.tanh %125 : vector<8x32xf32>
    %127 = vector.extract_strided_slice %112 {offsets = [0, 96], sizes = [8, 32], strides = [1, 1]} : vector<8x128xf32> to vector<8x32xf32>
    %128 = arith.negf %127 : vector<8x32xf32>
    %129 = math.exp %128 : vector<8x32xf32>
    %cst_35 = arith.constant 1.000000e+00 : f32
    %130 = vector.broadcast %cst_35 : f32 to vector<8x32xf32>
    %131 = arith.addf %130, %129 : vector<8x32xf32>
    %132 = arith.divf %130, %131 : vector<8x32xf32>
    %133 = arith.mulf %124, %101 : vector<8x32xf32>
    %134 = arith.mulf %118, %126 : vector<8x32xf32>
    %135 = arith.addf %133, %134 : vector<8x32xf32>
    %136 = math.tanh %135 : vector<8x32xf32>
    %137 = arith.mulf %132, %136 : vector<8x32xf32>
    %138 = arith.index_cast %c3_i32 : i32 to index
    %c0_36 = arith.constant 0 : index
    %c0_37 = arith.constant 0 : index
    %139 = vector.load %arg3[%138, %c0_36, %c0_37] : memref<8x8x32xf32, #tpu.memory_space<vmem>>, vector<1x8x32xf32>
    %140 = vector.shape_cast %139 : vector<1x8x32xf32> to vector<8x32xf32>
    %141 = vector.shape_cast %137 : vector<8x32xf32> to vector<1x8x32xf32>
    tpu.vector_store %arg3[%138, %c0_36, %c0_37], %141 {strides = array<i32>} : memref<8x8x32xf32, #tpu.memory_space<vmem>>, vector<1x8x32xf32>,
    %c4_i32 = arith.constant 4 : i32
    %142 = arith.index_cast %c4_i32 : i32 to index
    %c0_38 = arith.constant 0 : index
    %c0_39 = arith.constant 0 : index
    %143 = vector.load %arg1[%142, %c0_38, %c0_39] : memref<8x8x128xf32, #tpu.memory_space<vmem>>, vector<1x8x128xf32>
    %144 = vector.shape_cast %143 : vector<1x8x128xf32> to vector<8x128xf32>
    %cst_40 = arith.constant dense<0.000000e+00> : vector<8x128xf32>
    %145 = tpu.matmul %137, %3, %cst_40 {dimension_numbers = #tpu.dot_dimension_numbers<[1], [0], [0], [1], [0, 0, 1, 1], [], []>} : vector<8x32xf32>, vector<32x128xf32>, vector<8x128xf32> -> vector<8x128xf32>
    %146 = arith.addf %144, %145 : vector<8x128xf32>
    %147 = vector.extract_strided_slice %146 {offsets = [0, 0], sizes = [8, 32], strides = [1, 1]} : vector<8x128xf32> to vector<8x32xf32>
    %148 = arith.negf %147 : vector<8x32xf32>
    %149 = math.exp %148 : vector<8x32xf32>
    %cst_41 = arith.constant 1.000000e+00 : f32
    %150 = vector.broadcast %cst_41 : f32 to vector<8x32xf32>
    %151 = arith.addf %150, %149 : vector<8x32xf32>
    %152 = arith.divf %150, %151 : vector<8x32xf32>
    %153 = vector.extract_strided_slice %146 {offsets = [0, 32], sizes = [8, 32], strides = [1, 1]} : vector<8x128xf32> to vector<8x32xf32>
    %154 = arith.negf %153 : vector<8x32xf32>
    %155 = math.exp %154 : vector<8x32xf32>
    %cst_42 = arith.constant 1.000000e+00 : f32
    %156 = vector.broadcast %cst_42 : f32 to vector<8x32xf32>
    %157 = arith.addf %156, %155 : vector<8x32xf32>
    %158 = arith.divf %156, %157 : vector<8x32xf32>
    %159 = vector.extract_strided_slice %146 {offsets = [0, 64], sizes = [8, 32], strides = [1, 1]} : vector<8x128xf32> to vector<8x32xf32>
    %160 = math.tanh %159 : vector<8x32xf32>
    %161 = vector.extract_strided_slice %146 {offsets = [0, 96], sizes = [8, 32], strides = [1, 1]} : vector<8x128xf32> to vector<8x32xf32>
    %162 = arith.negf %161 : vector<8x32xf32>
    %163 = math.exp %162 : vector<8x32xf32>
    %cst_43 = arith.constant 1.000000e+00 : f32
    %164 = vector.broadcast %cst_43 : f32 to vector<8x32xf32>
    %165 = arith.addf %164, %163 : vector<8x32xf32>
    %166 = arith.divf %164, %165 : vector<8x32xf32>
    %167 = arith.mulf %158, %135 : vector<8x32xf32>
    %168 = arith.mulf %152, %160 : vector<8x32xf32>
    %169 = arith.addf %167, %168 : vector<8x32xf32>
    %170 = math.tanh %169 : vector<8x32xf32>
    %171 = arith.mulf %166, %170 : vector<8x32xf32>
    %172 = arith.index_cast %c4_i32 : i32 to index
    %c0_44 = arith.constant 0 : index
    %c0_45 = arith.constant 0 : index
    %173 = vector.load %arg3[%172, %c0_44, %c0_45] : memref<8x8x32xf32, #tpu.memory_space<vmem>>, vector<1x8x32xf32>
    %174 = vector.shape_cast %173 : vector<1x8x32xf32> to vector<8x32xf32>
    %175 = vector.shape_cast %171 : vector<8x32xf32> to vector<1x8x32xf32>
    tpu.vector_store %arg3[%172, %c0_44, %c0_45], %175 {strides = array<i32>} : memref<8x8x32xf32, #tpu.memory_space<vmem>>, vector<1x8x32xf32>,
    %c5_i32 = arith.constant 5 : i32
    %176 = arith.index_cast %c5_i32 : i32 to index
    %c0_46 = arith.constant 0 : index
    %c0_47 = arith.constant 0 : index
    %177 = vector.load %arg1[%176, %c0_46, %c0_47] : memref<8x8x128xf32, #tpu.memory_space<vmem>>, vector<1x8x128xf32>
    %178 = vector.shape_cast %177 : vector<1x8x128xf32> to vector<8x128xf32>
    %cst_48 = arith.constant dense<0.000000e+00> : vector<8x128xf32>
    %179 = tpu.matmul %171, %3, %cst_48 {dimension_numbers = #tpu.dot_dimension_numbers<[1], [0], [0], [1], [0, 0, 1, 1], [], []>} : vector<8x32xf32>, vector<32x128xf32>, vector<8x128xf32> -> vector<8x128xf32>
    %180 = arith.addf %178, %179 : vector<8x128xf32>
    %181 = vector.extract_strided_slice %180 {offsets = [0, 0], sizes = [8, 32], strides = [1, 1]} : vector<8x128xf32> to vector<8x32xf32>
    %182 = arith.negf %181 : vector<8x32xf32>
    %183 = math.exp %182 : vector<8x32xf32>
    %cst_49 = arith.constant 1.000000e+00 : f32
    %184 = vector.broadcast %cst_49 : f32 to vector<8x32xf32>
    %185 = arith.addf %184, %183 : vector<8x32xf32>
    %186 = arith.divf %184, %185 : vector<8x32xf32>
    %187 = vector.extract_strided_slice %180 {offsets = [0, 32], sizes = [8, 32], strides = [1, 1]} : vector<8x128xf32> to vector<8x32xf32>
    %188 = arith.negf %187 : vector<8x32xf32>
    %189 = math.exp %188 : vector<8x32xf32>
    %cst_50 = arith.constant 1.000000e+00 : f32
    %190 = vector.broadcast %cst_50 : f32 to vector<8x32xf32>
    %191 = arith.addf %190, %189 : vector<8x32xf32>
    %192 = arith.divf %190, %191 : vector<8x32xf32>
    %193 = vector.extract_strided_slice %180 {offsets = [0, 64], sizes = [8, 32], strides = [1, 1]} : vector<8x128xf32> to vector<8x32xf32>
    %194 = math.tanh %193 : vector<8x32xf32>
    %195 = vector.extract_strided_slice %180 {offsets = [0, 96], sizes = [8, 32], strides = [1, 1]} : vector<8x128xf32> to vector<8x32xf32>
    %196 = arith.negf %195 : vector<8x32xf32>
    %197 = math.exp %196 : vector<8x32xf32>
    %cst_51 = arith.constant 1.000000e+00 : f32
    %198 = vector.broadcast %cst_51 : f32 to vector<8x32xf32>
    %199 = arith.addf %198, %197 : vector<8x32xf32>
    %200 = arith.divf %198, %199 : vector<8x32xf32>
    %201 = arith.mulf %192, %169 : vector<8x32xf32>
    %202 = arith.mulf %186, %194 : vector<8x32xf32>
    %203 = arith.addf %201, %202 : vector<8x32xf32>
    %204 = math.tanh %203 : vector<8x32xf32>
    %205 = arith.mulf %200, %204 : vector<8x32xf32>
    %206 = arith.index_cast %c5_i32 : i32 to index
    %c0_52 = arith.constant 0 : index
    %c0_53 = arith.constant 0 : index
    %207 = vector.load %arg3[%206, %c0_52, %c0_53] : memref<8x8x32xf32, #tpu.memory_space<vmem>>, vector<1x8x32xf32>
    %208 = vector.shape_cast %207 : vector<1x8x32xf32> to vector<8x32xf32>
    %209 = vector.shape_cast %205 : vector<8x32xf32> to vector<1x8x32xf32>
    tpu.vector_store %arg3[%206, %c0_52, %c0_53], %209 {strides = array<i32>} : memref<8x8x32xf32, #tpu.memory_space<vmem>>, vector<1x8x32xf32>,
    %c6_i32 = arith.constant 6 : i32
    %210 = arith.index_cast %c6_i32 : i32 to index
    %c0_54 = arith.constant 0 : index
    %c0_55 = arith.constant 0 : index
    %211 = vector.load %arg1[%210, %c0_54, %c0_55] : memref<8x8x128xf32, #tpu.memory_space<vmem>>, vector<1x8x128xf32>
    %212 = vector.shape_cast %211 : vector<1x8x128xf32> to vector<8x128xf32>
    %cst_56 = arith.constant dense<0.000000e+00> : vector<8x128xf32>
    %213 = tpu.matmul %205, %3, %cst_56 {dimension_numbers = #tpu.dot_dimension_numbers<[1], [0], [0], [1], [0, 0, 1, 1], [], []>} : vector<8x32xf32>, vector<32x128xf32>, vector<8x128xf32> -> vector<8x128xf32>
    %214 = arith.addf %212, %213 : vector<8x128xf32>
    %215 = vector.extract_strided_slice %214 {offsets = [0, 0], sizes = [8, 32], strides = [1, 1]} : vector<8x128xf32> to vector<8x32xf32>
    %216 = arith.negf %215 : vector<8x32xf32>
    %217 = math.exp %216 : vector<8x32xf32>
    %cst_57 = arith.constant 1.000000e+00 : f32
    %218 = vector.broadcast %cst_57 : f32 to vector<8x32xf32>
    %219 = arith.addf %218, %217 : vector<8x32xf32>
    %220 = arith.divf %218, %219 : vector<8x32xf32>
    %221 = vector.extract_strided_slice %214 {offsets = [0, 32], sizes = [8, 32], strides = [1, 1]} : vector<8x128xf32> to vector<8x32xf32>
    %222 = arith.negf %221 : vector<8x32xf32>
    %223 = math.exp %222 : vector<8x32xf32>
    %cst_58 = arith.constant 1.000000e+00 : f32
    %224 = vector.broadcast %cst_58 : f32 to vector<8x32xf32>
    %225 = arith.addf %224, %223 : vector<8x32xf32>
    %226 = arith.divf %224, %225 : vector<8x32xf32>
    %227 = vector.extract_strided_slice %214 {offsets = [0, 64], sizes = [8, 32], strides = [1, 1]} : vector<8x128xf32> to vector<8x32xf32>
    %228 = math.tanh %227 : vector<8x32xf32>
    %229 = vector.extract_strided_slice %214 {offsets = [0, 96], sizes = [8, 32], strides = [1, 1]} : vector<8x128xf32> to vector<8x32xf32>
    %230 = arith.negf %229 : vector<8x32xf32>
    %231 = math.exp %230 : vector<8x32xf32>
    %cst_59 = arith.constant 1.000000e+00 : f32
    %232 = vector.broadcast %cst_59 : f32 to vector<8x32xf32>
    %233 = arith.addf %232, %231 : vector<8x32xf32>
    %234 = arith.divf %232, %233 : vector<8x32xf32>
    %235 = arith.mulf %226, %203 : vector<8x32xf32>
    %236 = arith.mulf %220, %228 : vector<8x32xf32>
    %237 = arith.addf %235, %236 : vector<8x32xf32>
    %238 = math.tanh %237 : vector<8x32xf32>
    %239 = arith.mulf %234, %238 : vector<8x32xf32>
    %240 = arith.index_cast %c6_i32 : i32 to index
    %c0_60 = arith.constant 0 : index
    %c0_61 = arith.constant 0 : index
    %241 = vector.load %arg3[%240, %c0_60, %c0_61] : memref<8x8x32xf32, #tpu.memory_space<vmem>>, vector<1x8x32xf32>
    %242 = vector.shape_cast %241 : vector<1x8x32xf32> to vector<8x32xf32>
    %243 = vector.shape_cast %239 : vector<8x32xf32> to vector<1x8x32xf32>
    tpu.vector_store %arg3[%240, %c0_60, %c0_61], %243 {strides = array<i32>} : memref<8x8x32xf32, #tpu.memory_space<vmem>>, vector<1x8x32xf32>,
    %c7_i32 = arith.constant 7 : i32
    %244 = arith.index_cast %c7_i32 : i32 to index
    %c0_62 = arith.constant 0 : index
    %c0_63 = arith.constant 0 : index
    %245 = vector.load %arg1[%244, %c0_62, %c0_63] : memref<8x8x128xf32, #tpu.memory_space<vmem>>, vector<1x8x128xf32>
    %246 = vector.shape_cast %245 : vector<1x8x128xf32> to vector<8x128xf32>
    %cst_64 = arith.constant dense<0.000000e+00> : vector<8x128xf32>
    %247 = tpu.matmul %239, %3, %cst_64 {dimension_numbers = #tpu.dot_dimension_numbers<[1], [0], [0], [1], [0, 0, 1, 1], [], []>} : vector<8x32xf32>, vector<32x128xf32>, vector<8x128xf32> -> vector<8x128xf32>
    %248 = arith.addf %246, %247 : vector<8x128xf32>
    %249 = vector.extract_strided_slice %248 {offsets = [0, 0], sizes = [8, 32], strides = [1, 1]} : vector<8x128xf32> to vector<8x32xf32>
    %250 = arith.negf %249 : vector<8x32xf32>
    %251 = math.exp %250 : vector<8x32xf32>
    %cst_65 = arith.constant 1.000000e+00 : f32
    %252 = vector.broadcast %cst_65 : f32 to vector<8x32xf32>
    %253 = arith.addf %252, %251 : vector<8x32xf32>
    %254 = arith.divf %252, %253 : vector<8x32xf32>
    %255 = vector.extract_strided_slice %248 {offsets = [0, 32], sizes = [8, 32], strides = [1, 1]} : vector<8x128xf32> to vector<8x32xf32>
    %256 = arith.negf %255 : vector<8x32xf32>
    %257 = math.exp %256 : vector<8x32xf32>
    %cst_66 = arith.constant 1.000000e+00 : f32
    %258 = vector.broadcast %cst_66 : f32 to vector<8x32xf32>
    %259 = arith.addf %258, %257 : vector<8x32xf32>
    %260 = arith.divf %258, %259 : vector<8x32xf32>
    %261 = vector.extract_strided_slice %248 {offsets = [0, 64], sizes = [8, 32], strides = [1, 1]} : vector<8x128xf32> to vector<8x32xf32>
    %262 = math.tanh %261 : vector<8x32xf32>
    %263 = vector.extract_strided_slice %248 {offsets = [0, 96], sizes = [8, 32], strides = [1, 1]} : vector<8x128xf32> to vector<8x32xf32>
    %264 = arith.negf %263 : vector<8x32xf32>
    %265 = math.exp %264 : vector<8x32xf32>
    %cst_67 = arith.constant 1.000000e+00 : f32
    %266 = vector.broadcast %cst_67 : f32 to vector<8x32xf32>
    %267 = arith.addf %266, %265 : vector<8x32xf32>
    %268 = arith.divf %266, %267 : vector<8x32xf32>
    %269 = arith.mulf %260, %237 : vector<8x32xf32>
    %270 = arith.mulf %254, %262 : vector<8x32xf32>
    %271 = arith.addf %269, %270 : vector<8x32xf32>
    %272 = math.tanh %271 : vector<8x32xf32>
    %273 = arith.mulf %268, %272 : vector<8x32xf32>
    %274 = arith.index_cast %c7_i32 : i32 to index
    %c0_68 = arith.constant 0 : index
    %c0_69 = arith.constant 0 : index
    %275 = vector.load %arg3[%274, %c0_68, %c0_69] : memref<8x8x32xf32, #tpu.memory_space<vmem>>, vector<1x8x32xf32>
    %276 = vector.shape_cast %275 : vector<1x8x32xf32> to vector<8x32xf32>
    %277 = vector.shape_cast %273 : vector<8x32xf32> to vector<1x8x32xf32>
    tpu.vector_store %arg3[%274, %c0_68, %c0_69], %277 {strides = array<i32>} : memref<8x8x32xf32, #tpu.memory_space<vmem>>, vector<1x8x32xf32>,
    %c8_i32 = arith.constant 8 : i32
    %c0_70 = arith.constant 0 : index
    %c0_71 = arith.constant 0 : index
    %278 = vector.load %arg6[%c0_70, %c0_71] : memref<8x32xf32, #tpu.memory_space<vmem>>, vector<8x32xf32>
    tpu.vector_store %arg6[%c0_70, %c0_71], %273 {strides = array<i32>} : memref<8x32xf32, #tpu.memory_space<vmem>>, vector<8x32xf32>,
    %c0_72 = arith.constant 0 : index
    %c0_73 = arith.constant 0 : index
    %279 = vector.load %arg7[%c0_72, %c0_73] : memref<8x32xf32, #tpu.memory_space<vmem>>, vector<8x32xf32>
    tpu.vector_store %arg7[%c0_72, %c0_73], %271 {strides = array<i32>} : memref<8x32xf32, #tpu.memory_space<vmem>>, vector<8x32xf32>,
    %c0_i32_74 = arith.constant 0 : i32
    %280 = arith.cmpi eq, %arg0, %c0_i32_74 : i32
    %281 = arith.extui %280 : i1 to i32
    %c0_i32_75 = arith.constant 0 : i32
    %282 = arith.cmpi ne, %281, %c0_i32_75 : i32
    scf.if %282 {
      %c0_76 = arith.constant 0 : index
      %c0_77 = arith.constant 0 : index
      %283 = vector.load %arg4[%c0_76, %c0_77] : memref<8x32xf32, #tpu.memory_space<vmem>>, vector<8x32xf32>
      tpu.vector_store %arg4[%c0_76, %c0_77], %273 {strides = array<i32>} : memref<8x32xf32, #tpu.memory_space<vmem>>, vector<8x32xf32>,
      %c0_78 = arith.constant 0 : index
      %c0_79 = arith.constant 0 : index
      %284 = vector.load %arg5[%c0_78, %c0_79] : memref<8x32xf32, #tpu.memory_space<vmem>>, vector<8x32xf32>
      tpu.vector_store %arg5[%c0_78, %c0_79], %271 {strides = array<i32>} : memref<8x32xf32, #tpu.memory_space<vmem>>, vector<8x32xf32>,
    } else {
    }
    return
  }
  func.func @transform_0(%arg0: i32) -> (i32, i32, i32) {
    %c0_i32 = arith.constant 0 : i32
    %c0_i32_0 = arith.constant 0 : i32
    %c0_i32_1 = arith.constant 0 : i32
    return %arg0, %c0_i32, %c0_i32_0 : i32, i32, i32
  }
  func.func @transform_1(%arg0: i32) -> (i32, i32) {
    %c0_i32 = arith.constant 0 : i32
    %c0_i32_0 = arith.constant 0 : i32
    %c0_i32_1 = arith.constant 0 : i32
    return %c0_i32, %c0_i32_0 : i32, i32
  }
  func.func @transform_2(%arg0: i32) -> (i32, i32, i32) {
    %c0_i32 = arith.constant 0 : i32
    %c0_i32_0 = arith.constant 0 : i32
    %c0_i32_1 = arith.constant 0 : i32
    return %arg0, %c0_i32, %c0_i32_0 : i32, i32, i32
  }
  func.func @transform_3(%arg0: i32) -> (i32, i32) {
    %c0_i32 = arith.constant 0 : i32
    %c0_i32_0 = arith.constant 0 : i32
    %c0_i32_1 = arith.constant 0 : i32
    return %c0_i32, %c0_i32_0 : i32, i32
  }
  func.func @transform_4(%arg0: i32) -> (i32, i32) {
    %c0_i32 = arith.constant 0 : i32
    %c0_i32_0 = arith.constant 0 : i32
    %c0_i32_1 = arith.constant 0 : i32
    return %c0_i32, %c0_i32_0 : i32, i32
  }
}

</mosaic_0001>

<bundles_post_ra>
// kernel: tpu_custom_call.1
= control target key start
LH: loop header
LB: loop body
LE: loop exit
PB: predicated region body
PF: predicated region fallthrough
CT: control target
= control target key end

     0   :  { %10 = vsyncpa [#allocation5], 0  ;;  %s1574_s0 = inlined_call_operand.hbm [shape: f32[8,8,128], index: 0, kind: input, shape index: {}]   ;;  %s1575_s1 = inlined_call_operand.hbm [shape: f32[32,128], index: 1, kind: input, shape index: {}]   ;;  %s1576_s2 = inlined_call_operand.hbm [shape: f32[8,8,32], index: 2, kind: output, shape index: {0}]   ;;  %s1577_s3 = inlined_call_operand.hbm [shape: f32[8,32], index: 3, kind: output, shape index: {1}]   ;;  %s1578_s4 = inlined_call_operand.hbm [shape: f32[8,32], index: 4, kind: output, shape index: {2}]  }
   0x1   :  { %11 = vsyncpa [#allocation8], 0 }
   0x2   :  { %12 = vsyncpa [#allocation6], 0 }
   0x3   :  { %13 = vsyncpa [#allocation11], 0  ;;  %s1344_s15 = smov [#allocation4]   ;;  %s1226_s19 = scalar_lea.hbm %s1574_s0, 1024 }
   0x4   :  { %s19_s16 = sshll.u32 %s1344_s15, 4  ;;  %p1227_p0 = scmp.ne.s32.totalorder %s1574_s0, %s1226_s19  ;;  %s20_s16 = int_to_ptr.vmem [resolvable:$true] %s19_s16 }
   0x5   :  { %p1230_p1 = scmp.lt.u32.totalorder %s1226_s19, %s1574_s0 }
   0x7   :  { %p1232_p2 = pnand %p1230_p1, %p1227_p0 }
   0x9   :  { %1235 = shalt.err (!%p1232_p2)
}
   0xa   :  { %s1236_s24 = scalar_lea.vmem %s20_s16, 1024  ;;  %p1241_p4 = scmp.lt.s32.totalorder %s20_s16, %s20_s16 }
   0xb   :  { %p1237_p3 = scmp.ne.s32.totalorder %s20_s16, %s1236_s24  ;;  %p1242_p5 = scmp.lt.s32.totalorder %s1236_s24, %s1236_s24 }
   0xd   :  { %p1243_p6 = por %p1242_p5, %p1241_p4 }
   0xf   :  { %p1244_p7 = pnand %p1243_p6, %p1237_p3 }
  0x11   :  { %1247 = shalt.err (!%p1244_p7)
}
  0x12   :  { %s1345_s25 = smov 128   ;;  %s1346_s26 = smov 8  }
  0x13   :  { %25 = dma.hbm_to_vmem [thread:$0]  %s1574_s0, 1024, %s20_s16, [#allocation5], %s1345_s25, %s1345_s25, %s1346_s26  }
  0x14   :  { %s1347_s29 = smov [#allocation7]   ;;  %s1248_s7 = scalar_lea.hbm %s1575_s1, 512 }
  0x15   :  { %s31_s30 = sshll.u32 %s1347_s29, 4  ;;  %p1249_p8 = scmp.ne.s32.totalorder %s1575_s1, %s1248_s7  ;;  %s32_s30 = int_to_ptr.vmem [resolvable:$true] %s31_s30 }
  0x16   :  { %p1252_p9 = scmp.lt.u32.totalorder %s1248_s7, %s1575_s1 }
  0x18   :  { %p1254_p10 = pnand %p1252_p9, %p1249_p8 }
  0x1a   :  { %1257 = shalt.err (!%p1254_p10)
}
  0x1b   :  { %s1258_s12 = scalar_lea.vmem %s32_s30, 512  ;;  %p1263_p12 = scmp.lt.s32.totalorder %s32_s30, %s32_s30 }
  0x1c   :  { %p1259_p11 = scmp.ne.s32.totalorder %s32_s30, %s1258_s12  ;;  %p1264_p13 = scmp.lt.s32.totalorder %s1258_s12, %s1258_s12 }
  0x1e   :  { %p1265_p0 = por %p1264_p13, %p1263_p12 }
  0x20   :  { %p1266_p1 = pnand %p1265_p0, %p1259_p11 }
  0x22   :  { %1269 = shalt.err (!%p1266_p1)
}
  0x23   :  { %37 = dma.hbm_to_vmem [thread:$0]  %s1575_s1, 512, %s32_s30, [#allocation8], %s1345_s25, %s1345_s25, %s1346_s26  }
  0x24   :  { %1336 = dma.done.wait [#allocation5], 1024  }
  0x25   :  { %1337 = vsyncadd [#allocation5], 4294966272 }
  0x26   :  { %1338 = dma.done.wait [#allocation8], 512  }
  0x27   :  { %1339 = vsyncadd [#allocation8], 4294966784  ;;  %vm48_vm0 = vcmask 261120   ;;  %v1348_v0 = vmov 0.0|0.0   ;;  %vm1349_vm1 = vmmov 0   ;;  %v1350_v1 = vmov 0.0  }
  0x28   :  { %1101 = vmatprep.subr.bf16.mxu0 %v1348_v0  ;;  %1021 = vmatprep.mubr.msk.f32.mxu0 %vm1349_vm1, %v1350_v1  ;;  %49 = vst.msk [vmem:[#allocation2] sm:$0xff] %vm48_vm0, %v1350_v1  ;;  %50 = vst.msk [vmem:[#allocation3] sm:$0xff] %vm48_vm0, %v1350_v1  ;;  %v51_v2 = vld [vmem:[#allocation7] sm:$0xff]  ;;  %v52_v3 = vld [vmem:[#allocation7 + $0x8] sm:$0xff]  ;;  %s1351_s1 = smov 64   ;;  %s1352_s14 = smov 32  }
  0x29   :  { %1107 = vmatprep.subr.bf16.mxu1 %v1348_v0  ;;  %1032 = vmatprep.mubr.msk.f32.mxu1 %vm1349_vm1, %v1350_v1  ;;  %v53_v4 = vld [vmem:[#allocation7 + $0x10] sm:$0xff]  ;;  %v1422_v5 = vpack.c.bf16 %v52_v3, %v51_v2  ;;  %v54_v6 = vld [vmem:[#allocation7 + $0x18] sm:$0xff]  ;;  %v57_v9 = vld [vmem:[#allocation4] sm:$0xff]  ;;  %s1353_s15 = smov 96   ;;  %s1354_s16 = smov [#allocation10]  }
  0x2a   :  { %v1425_v7 = vpack.c.bf16 %v54_v6, %v53_v4  ;;  %v167_v29 = vld [vmem:[#allocation4 + $0x8] sm:$0xff]  ;;  %v272_v47 = vld [vmem:[#allocation4 + $0x10] sm:$0xff]  ;;  %v377_v3 = vld [vmem:[#allocation4 + $0x18] sm:$0xff]  ;;  %s930_s17 = sshll.u32 %s1354_s16, 4  ;;  %s1355_s18 = smov [#allocation9]   ;;  %s931_s17 = int_to_ptr.vmem [resolvable:$true] %s930_s17 }
  0x2b   :  { %1103 = vmatpush3.bf16.msra.mxu0 %v1422_v5  ;;  %1109 = vmatpush3.bf16.msra.mxu1 %v1422_v5  ;;  %s917_s19 = sshll.u32 %s1355_s18, 4  ;;  %s1356_s20 = smov [#allocation12]   ;;  %s1518_s19 = int_to_ptr.vmem [resolvable:$true] %s917_s19 }
  0x2c   :  { %1104 = vmatprep.subr.bf16.mxu0 %v1348_v0  ;;  %1110 = vmatprep.subr.bf16.mxu1 %v1348_v0  ;;  %s940_s21 = sshll.u32 %s1356_s20, 4  ;;  %s1270_s22 = scalar_lea.vmem %s931_s17, 128  ;;  %s1523_s21 = int_to_ptr.vmem [resolvable:$true] %s940_s21 }
  0x2d   :  { %p1271_p2 = scmp.ne.s32.totalorder %s931_s17, %s1270_s22  ;;  %p1275_p3 = scmp.lt.s32.totalorder %s931_s17, %s931_s17 }
  0x2e   :  { %p1276_p4 = scmp.lt.s32.totalorder %s1270_s22, %s1270_s22 }
  0x2f   :  { %1106 = vmatpush3.bf16.msra.mxu0 %v1425_v7  ;;  %v55_v8 = vld [vmem:[#allocation2] sm:$0xff]  ;;  %1112 = vmatpush3.bf16.msra.mxu1 %v1425_v7  ;;  %v56_v14 = vld [vmem:[#allocation3] sm:$0xff] }
  0x30   :  { %1113 = vmatprep.subr.bf16.mxu0 %v1348_v0  ;;  %1119 = vmatprep.subr.bf16.mxu1 %v1348_v0  ;;  %p1277_p5 = por %p1276_p4, %p1275_p3 }
  0x32   :  { %1022 = vmatmul.mubr.msk.f32.vlgmr.msra.gmra.mrb[0].mxu0 %vm48_vm0, %v55_v8  ;;  %p1278_p6 = pnand %p1277_p5, %p1271_p2 }
  0x33   :  { %1115 = vmatpush3.bf16.msra.mxu0 %v1422_v5  ;;  %1043 = vmatprep.mubr.msk.f32.mxu0 %vm1349_vm1, %v1350_v1 }
  0x34   :  { %1116 = vmatprep.subr.bf16.mxu0 %v1348_v0 }
  0x37   :  { %1118 = vmatpush3.bf16.msra.mxu0 %v1425_v7 }
  0x38   :  { %1125 = vmatprep.subr.bf16.mxu0 %v1348_v0 }
 0x105   :  { %v128_v10 = vpop.f32.mrb[0].mxu0 }
 0x106   :  { %v132_v11 = vadd.f32 %v128_v10, %v57_v9  ;;  %v1023_v12 = vpop.f32.mrb[1].mxu0 }
 0x108   :  { %1162 = vtanh.f32 %v132_v11  ;;  %v958_v15 = vmul.f32 -1.442695, %v132_v11 }
 0x10a   :  { %1164 = vpow2.f32 %v958_v15 }
 0x112   :  { %v1163_v13 = vpop.eup %1162 }
 0x113   :  { %146 = vrot.lane.b32.xlu0 %v1163_v13, %s1351_s1 }
 0x114   :  { %v1165_v16 = vpop.eup %1164 }
 0x115   :  { %v136_v17 = vadd.f32 1.0, %v1165_v16 }
 0x117   :  { %141 = vrot.lane.b32.xlu0 %v56_v14, %s1352_s14  ;;  %1166 = vrcp.f32 %v136_v17 }
 0x121   :  { %v1167_v18 = vpop.eup %1166 }
 0x185   :  { %v147_v19 = vpop.permute.xlu0 %146 }
 0x186   :  { %v149_v20 = vmul.f32 %v1167_v18, %v147_v19 }
 0x188   :  { %151 = vrot.lane.b32.xlu1 %v149_v20, %s1352_s14 }
 0x189   :  { %v142_v21 = vpop.permute.xlu0 %141 }
 0x18a   :  { %v144_v22 = vmul.f32 %v1167_v18, %v142_v21 }
 0x1fa   :  { %v152_v23 = vpop.permute.xlu1 %151 }
 0x1fb   :  { %v154_v24 = vadd.f32 %v152_v23, %v144_v22  ;;  %v482_v23 = vld [vmem:[#allocation4 + $0x20] sm:$0xff] }
 0x1fd   :  { %1168 = vtanh.f32 %v154_v24 }
 0x207   :  { %v1169_v25 = vpop.eup %1168 }
 0x208   :  { %157 = vrot.lane.b32.xlu1 %v1169_v25, %s1351_s1 }
 0x27a   :  { %v158_v26 = vpop.permute.xlu1 %157 }
 0x27b   :  { %v160_v27 = vmul.f32 %v1167_v18, %v158_v26 }
 0x27d   :  { %162 = vrot.lane.b32.xlu0 %v160_v27, %s1352_s14 }
 0x2ef   :  { %v163_v28 = vpop.permute.xlu0 %162 }
 0x2f0   :  { %165 = vst.msk [vmem:[#allocation9] sm:$0xff] %vm48_vm0, %v163_v28  ;;  %1033 = vmatmul.mubr.msk.f32.vlgmr.msra.gmra.mrb[0].mxu1 %vm48_vm0, %v163_v28 }
 0x2f1   :  { %1121 = vmatpush3.bf16.msra.mxu1 %v1422_v5  ;;  %1054 = vmatprep.mubr.msk.f32.mxu1 %vm1349_vm1, %v1350_v1 }
 0x2f2   :  { %1122 = vmatprep.subr.bf16.mxu1 %v1348_v0 }
 0x2f5   :  { %1124 = vmatpush3.bf16.msra.mxu1 %v1425_v7 }
 0x2f6   :  { %1131 = vmatprep.subr.bf16.mxu1 %v1348_v0 }
 0x3c3   :  { %v236_v30 = vpop.f32.mrb[0].mxu1 }
 0x3c4   :  { %v240_v31 = vadd.f32 %v236_v30, %v167_v29  ;;  %v1034_v32 = vpop.f32.mrb[1].mxu1 }
 0x3c6   :  { %1170 = vtanh.f32 %v240_v31  ;;  %v960_v34 = vmul.f32 -1.442695, %v240_v31 }
 0x3c8   :  { %1172 = vpow2.f32 %v960_v34 }
 0x3d0   :  { %v1171_v33 = vpop.eup %1170 }
 0x3d1   :  { %250 = vrot.lane.b32.xlu1 %v1171_v33, %s1351_s1 }
 0x3d2   :  { %v1173_v35 = vpop.eup %1172 }
 0x3d3   :  { %v244_v36 = vadd.f32 1.0, %v1173_v35 }
 0x3d5   :  { %1174 = vrcp.f32 %v244_v36 }
 0x3df   :  { %v1175_v37 = vpop.eup %1174 }
 0x3e0   :  { %v248_v40 = vmul.f32 %v1175_v37, %v154_v24 }
 0x443   :  { %v251_v38 = vpop.permute.xlu1 %250 }
 0x444   :  { %v253_v39 = vmul.f32 %v1175_v37, %v251_v38 }
 0x446   :  { %255 = vrot.lane.b32.xlu0 %v253_v39, %s1352_s14 }
 0x4b8   :  { %v256_v41 = vpop.permute.xlu0 %255 }
 0x4b9   :  { %v258_v42 = vadd.f32 %v256_v41, %v248_v40  ;;  %v587_v41 = vld [vmem:[#allocation4 + $0x28] sm:$0xff] }
 0x4bb   :  { %1176 = vtanh.f32 %v258_v42 }
 0x4c5   :  { %v1177_v43 = vpop.eup %1176 }
 0x4c6   :  { %261 = vrot.lane.b32.xlu1 %v1177_v43, %s1351_s1 }
 0x538   :  { %v262_v44 = vpop.permute.xlu1 %261 }
 0x539   :  { %v264_v45 = vmul.f32 %v1175_v37, %v262_v44 }
 0x53b   :  { %266 = vrot.lane.b32.xlu0 %v264_v45, %s1352_s14 }
 0x5ad   :  { %v267_v46 = vpop.permute.xlu0 %266 }
 0x5ae   :  { %270 = vst.msk [vmem:[#allocation9 + $0x8] sm:$0xff] %vm48_vm0, %v267_v46  ;;  %1044 = vmatmul.mubr.msk.f32.vlgmr.msra.gmra.mrb[2].mxu0 %vm48_vm0, %v267_v46 }
 0x5af   :  { %1127 = vmatpush3.bf16.msra.mxu0 %v1422_v5  ;;  %1065 = vmatprep.mubr.msk.f32.mxu0 %vm1349_vm1, %v1350_v1 }
 0x5b0   :  { %1128 = vmatprep.subr.bf16.mxu0 %v1348_v0 }
 0x5b3   :  { %1130 = vmatpush3.bf16.msra.mxu0 %v1425_v7 }
 0x5b4   :  { %1137 = vmatprep.subr.bf16.mxu0 %v1348_v0 }
 0x681   :  { %v341_v48 = vpop.f32.mrb[2].mxu0 }
 0x682   :  { %v345_v49 = vadd.f32 %v341_v48, %v272_v47  ;;  %v1045_v50 = vpop.f32.mrb[3].mxu0 }
 0x684   :  { %1178 = vtanh.f32 %v345_v49  ;;  %v962_v52 = vmul.f32 -1.442695, %v345_v49 }
 0x686   :  { %1180 = vpow2.f32 %v962_v52 }
 0x68e   :  { %v1179_v51 = vpop.eup %1178 }
 0x68f   :  { %355 = vrot.lane.b32.xlu1 %v1179_v51, %s1351_s1 }
 0x690   :  { %v1181_v53 = vpop.eup %1180 }
 0x691   :  { %v349_v54 = vadd.f32 1.0, %v1181_v53 }
 0x693   :  { %1182 = vrcp.f32 %v349_v54 }
 0x69d   :  { %v1183_v55 = vpop.eup %1182 }
 0x69e   :  { %v353_v58 = vmul.f32 %v1183_v55, %v258_v42 }
 0x701   :  { %v356_v56 = vpop.permute.xlu1 %355 }
 0x702   :  { %v358_v57 = vmul.f32 %v1183_v55, %v356_v56 }
 0x704   :  { %360 = vrot.lane.b32.xlu0 %v358_v57, %s1352_s14 }
 0x776   :  { %v361_v59 = vpop.permute.xlu0 %360 }
 0x777   :  { %v363_v60 = vadd.f32 %v361_v59, %v353_v58 }
 0x779   :  { %1184 = vtanh.f32 %v363_v60 }
 0x783   :  { %v1185_v61 = vpop.eup %1184 }
 0x784   :  { %366 = vrot.lane.b32.xlu1 %v1185_v61, %s1351_s1 }
 0x7f6   :  { %v367_v62 = vpop.permute.xlu1 %366 }
 0x7f7   :  { %v369_v63 = vmul.f32 %v1183_v55, %v367_v62  ;;  %v692_v55 = vld [vmem:[#allocation4 + $0x30] sm:$0xff] }
 0x7f9   :  { %371 = vrot.lane.b32.xlu0 %v369_v63, %s1352_s14 }
 0x86b   :  { %v372_v2 = vpop.permute.xlu0 %371 }
 0x86c   :  { %375 = vst.msk [vmem:[#allocation9 + $0x10] sm:$0xff] %vm48_vm0, %v372_v2  ;;  %1055 = vmatmul.mubr.msk.f32.vlgmr.msra.gmra.mrb[2].mxu1 %vm48_vm0, %v372_v2 }
 0x86d   :  { %1133 = vmatpush3.bf16.msra.mxu1 %v1422_v5  ;;  %1076 = vmatprep.mubr.msk.f32.mxu1 %vm1349_vm1, %v1350_v1 }
 0x86e   :  { %1134 = vmatprep.subr.bf16.mxu1 %v1348_v0 }
 0x871   :  { %1136 = vmatpush3.bf16.msra.mxu1 %v1425_v7 }
 0x872   :  { %1143 = vmatprep.subr.bf16.mxu1 %v1348_v0 }
 0x93f   :  { %v446_v4 = vpop.f32.mrb[2].mxu1 }
 0x940   :  { %v450_v6 = vadd.f32 %v446_v4, %v377_v3  ;;  %v1056_v8 = vpop.f32.mrb[3].mxu1 }
 0x942   :  { %1186 = vtanh.f32 %v450_v6  ;;  %v964_v10 = vmul.f32 -1.442695, %v450_v6 }
 0x944   :  { %1188 = vpow2.f32 %v964_v10 }
 0x94c   :  { %v1187_v9 = vpop.eup %1186 }
 0x94d   :  { %460 = vrot.lane.b32.xlu1 %v1187_v9, %s1351_s1 }
 0x94e   :  { %v1189_v11 = vpop.eup %1188 }
 0x94f   :  { %v454_v12 = vadd.f32 1.0, %v1189_v11 }
 0x951   :  { %1190 = vrcp.f32 %v454_v12 }
 0x95b   :  { %v1191_v13 = vpop.eup %1190 }
 0x95c   :  { %v458_v16 = vmul.f32 %v1191_v13, %v363_v60 }
 0x9bf   :  { %v461_v14 = vpop.permute.xlu1 %460 }
 0x9c0   :  { %v463_v15 = vmul.f32 %v1191_v13, %v461_v14 }
 0x9c2   :  { %465 = vrot.lane.b32.xlu0 %v463_v15, %s1352_s14 }
 0xa34   :  { %v466_v17 = vpop.permute.xlu0 %465 }
 0xa35   :  { %v468_v18 = vadd.f32 %v466_v17, %v458_v16 }
 0xa37   :  { %1192 = vtanh.f32 %v468_v18 }
 0xa41   :  { %v1193_v19 = vpop.eup %1192 }
 0xa42   :  { %471 = vrot.lane.b32.xlu1 %v1193_v19, %s1351_s1 }
 0xab4   :  { %v472_v20 = vpop.permute.xlu1 %471 }
 0xab5   :  { %v474_v21 = vmul.f32 %v1191_v13, %v472_v20  ;;  %v797_v13 = vld [vmem:[#allocation4 + $0x38] sm:$0xff] }
 0xab7   :  { %476 = vrot.lane.b32.xlu0 %v474_v21, %s1352_s14 }
 0xb29   :  { %v477_v22 = vpop.permute.xlu0 %476 }
 0xb2a   :  { %480 = vst.msk [vmem:[#allocation9 + $0x18] sm:$0xff] %vm48_vm0, %v477_v22  ;;  %1066 = vmatmul.mubr.msk.f32.vlgmr.msra.gmra.mrb[4].mxu0 %vm48_vm0, %v477_v22 }
 0xb2b   :  { %1139 = vmatpush3.bf16.msra.mxu0 %v1422_v5  ;;  %1087 = vmatprep.mubr.msk.f32.mxu0 %vm1349_vm1, %v1350_v1 }
 0xb2c   :  { %1140 = vmatprep.subr.bf16.mxu0 %v1348_v0 }
 0xb2f   :  { %1142 = vmatpush3.bf16.msra.mxu0 %v1425_v7 }
 0xbfd   :  { %v551_v24 = vpop.f32.mrb[4].mxu0 }
 0xbfe   :  { %v555_v25 = vadd.f32 %v551_v24, %v482_v23  ;;  %v1067_v26 = vpop.f32.mrb[5].mxu0 }
 0xc00   :  { %1194 = vtanh.f32 %v555_v25  ;;  %v966_v28 = vmul.f32 -1.442695, %v555_v25 }
 0xc02   :  { %1196 = vpow2.f32 %v966_v28 }
 0xc0a   :  { %v1195_v27 = vpop.eup %1194 }
 0xc0b   :  { %565 = vrot.lane.b32.xlu1 %v1195_v27, %s1351_s1 }
 0xc0c   :  { %v1197_v29 = vpop.eup %1196 }
 0xc0d   :  { %v559_v30 = vadd.f32 1.0, %v1197_v29 }
 0xc0f   :  { %1198 = vrcp.f32 %v559_v30 }
 0xc19   :  { %v1199_v31 = vpop.eup %1198 }
 0xc1a   :  { %v563_v34 = vmul.f32 %v1199_v31, %v468_v18 }
 0xc7d   :  { %v566_v32 = vpop.permute.xlu1 %565 }
 0xc7e   :  { %v568_v33 = vmul.f32 %v1199_v31, %v566_v32 }
 0xc80   :  { %570 = vrot.lane.b32.xlu0 %v568_v33, %s1352_s14 }
 0xcf2   :  { %v571_v35 = vpop.permute.xlu0 %570 }
 0xcf3   :  { %v573_v36 = vadd.f32 %v571_v35, %v563_v34 }
 0xcf5   :  { %1200 = vtanh.f32 %v573_v36 }
 0xcff   :  { %v1201_v37 = vpop.eup %1200 }
 0xd00   :  { %576 = vrot.lane.b32.xlu1 %v1201_v37, %s1351_s1 }
 0xd72   :  { %v577_v38 = vpop.permute.xlu1 %576 }
 0xd73   :  { %v579_v39 = vmul.f32 %v1199_v31, %v577_v38 }
 0xd75   :  { %581 = vrot.lane.b32.xlu0 %v579_v39, %s1352_s14 }
 0xde7   :  { %v582_v40 = vpop.permute.xlu0 %581 }
 0xde8   :  { %585 = vst.msk [vmem:[#allocation9 + $0x20] sm:$0xff] %vm48_vm0, %v582_v40  ;;  %1077 = vmatmul.mubr.msk.f32.vlgmr.msra.gmra.mrb[4].mxu1 %vm48_vm0, %v582_v40 }
 0xde9   :  { %1145 = vmatpush3.bf16.msra.mxu1 %v1422_v5  ;;  %1098 = vmatprep.mubr.msk.f32.mxu1 %vm1349_vm1, %v1350_v1 }
 0xdea   :  { %1146 = vmatprep.subr.bf16.mxu1 %v1348_v0 }
 0xded   :  { %1148 = vmatpush3.bf16.msra.mxu1 %v1425_v7 }
 0xebb   :  { %v656_v42 = vpop.f32.mrb[4].mxu1 }
 0xebc   :  { %v660_v43 = vadd.f32 %v656_v42, %v587_v41  ;;  %v1078_v44 = vpop.f32.mrb[5].mxu1 }
 0xebe   :  { %1202 = vtanh.f32 %v660_v43  ;;  %v968_v46 = vmul.f32 -1.442695, %v660_v43 }
 0xec0   :  { %1204 = vpow2.f32 %v968_v46 }
 0xec8   :  { %v1203_v45 = vpop.eup %1202 }
 0xec9   :  { %670 = vrot.lane.b32.xlu1 %v1203_v45, %s1351_s1 }
 0xeca   :  { %v1205_v47 = vpop.eup %1204 }
 0xecb   :  { %v664_v48 = vadd.f32 1.0, %v1205_v47 }
 0xecd   :  { %1206 = vrcp.f32 %v664_v48 }
 0xed7   :  { %v1207_v5 = vpop.eup %1206 }
 0xed8   :  { %v668_v0 = vmul.f32 %v1207_v5, %v573_v36 }
 0xf3b   :  { %v671_v49 = vpop.permute.xlu1 %670 }
 0xf3c   :  { %v673_v1 = vmul.f32 %v1207_v5, %v671_v49 }
 0xf3e   :  { %675 = vrot.lane.b32.xlu0 %v673_v1, %s1352_s14 }
 0xfb0   :  { %v676_v7 = vpop.permute.xlu0 %675 }
 0xfb1   :  { %v678_v50 = vadd.f32 %v676_v7, %v668_v0 }
 0xfb3   :  { %1208 = vtanh.f32 %v678_v50 }
 0xfbd   :  { %v1209_v51 = vpop.eup %1208 }
 0xfbe   :  { %681 = vrot.lane.b32.xlu1 %v1209_v51, %s1351_s1 }
0x1030   :  { %v682_v52 = vpop.permute.xlu1 %681 }
0x1031   :  { %v684_v53 = vmul.f32 %v1207_v5, %v682_v52 }
0x1033   :  { %686 = vrot.lane.b32.xlu0 %v684_v53, %s1352_s14 }
0x10a5   :  { %v687_v54 = vpop.permute.xlu0 %686 }
0x10a6   :  { %690 = vst.msk [vmem:[#allocation9 + $0x28] sm:$0xff] %vm48_vm0, %v687_v54  ;;  %1088 = vmatmul.mubr.msk.f32.vlgmr.msra.gmra.mrb[6].mxu0 %vm48_vm0, %v687_v54 }
0x1179   :  { %v761_v56 = vpop.f32.mrb[6].mxu0 }
0x117a   :  { %v765_v57 = vadd.f32 %v761_v56, %v692_v55  ;;  %v1089_v58 = vpop.f32.mrb[7].mxu0 }
0x117c   :  { %1210 = vtanh.f32 %v765_v57  ;;  %v970_v60 = vmul.f32 -1.442695, %v765_v57 }
0x117e   :  { %1212 = vpow2.f32 %v970_v60 }
0x1186   :  { %v1211_v59 = vpop.eup %1210 }
0x1187   :  { %775 = vrot.lane.b32.xlu1 %v1211_v59, %s1351_s1 }
0x1188   :  { %v1213_v61 = vpop.eup %1212 }
0x1189   :  { %v769_v62 = vadd.f32 1.0, %v1213_v61 }
0x118b   :  { %1214 = vrcp.f32 %v769_v62 }
0x1195   :  { %v1215_v63 = vpop.eup %1214 }
0x1196   :  { %v773_v4 = vmul.f32 %v1215_v63, %v678_v50 }
0x11f9   :  { %v776_v2 = vpop.permute.xlu1 %775 }
0x11fa   :  { %v778_v3 = vmul.f32 %v1215_v63, %v776_v2 }
0x11fc   :  { %780 = vrot.lane.b32.xlu0 %v778_v3, %s1352_s14 }
0x126e   :  { %v781_v6 = vpop.permute.xlu0 %780 }
0x126f   :  { %v783_v8 = vadd.f32 %v781_v6, %v773_v4 }
0x1271   :  { %1216 = vtanh.f32 %v783_v8 }
0x127b   :  { %v1217_v9 = vpop.eup %1216 }
0x127c   :  { %786 = vrot.lane.b32.xlu1 %v1217_v9, %s1351_s1 }
0x12ee   :  { %v787_v10 = vpop.permute.xlu1 %786 }
0x12ef   :  { %v789_v11 = vmul.f32 %v1215_v63, %v787_v10 }
0x12f1   :  { %791 = vrot.lane.b32.xlu0 %v789_v11, %s1352_s14 }
0x1363   :  { %v792_v12 = vpop.permute.xlu0 %791 }
0x1364   :  { %795 = vst.msk [vmem:[#allocation9 + $0x30] sm:$0xff] %vm48_vm0, %v792_v12  ;;  %1099 = vmatmul.mubr.msk.f32.vlgmr.msra.gmra.mrb[6].mxu1 %vm48_vm0, %v792_v12 }
0x1437   :  { %v866_v14 = vpop.f32.mrb[6].mxu1 }
0x1438   :  { %v870_v15 = vadd.f32 %v866_v14, %v797_v13  ;;  %v1100_v16 = vpop.f32.mrb[7].mxu1 }
0x143a   :  { %1218 = vtanh.f32 %v870_v15  ;;  %v972_v18 = vmul.f32 -1.442695, %v870_v15 }
0x143c   :  { %1220 = vpow2.f32 %v972_v18 }
0x1444   :  { %v1219_v17 = vpop.eup %1218 }
0x1445   :  { %880 = vrot.lane.b32.xlu1 %v1219_v17, %s1351_s1 }
0x1446   :  { %v1221_v19 = vpop.eup %1220 }
0x1447   :  { %v874_v20 = vadd.f32 1.0, %v1221_v19 }
0x1449   :  { %1222 = vrcp.f32 %v874_v20 }
0x1453   :  { %v1223_v21 = vpop.eup %1222 }
0x1454   :  { %v878_v24 = vmul.f32 %v1223_v21, %v783_v8 }
0x14b7   :  { %v881_v22 = vpop.permute.xlu1 %880 }
0x14b8   :  { %v883_v23 = vmul.f32 %v1223_v21, %v881_v22 }
0x14ba   :  { %885 = vrot.lane.b32.xlu0 %v883_v23, %s1352_s14 }
0x152c   :  { %v886_v25 = vpop.permute.xlu0 %885 }
0x152d   :  { %v888_v26 = vadd.f32 %v886_v25, %v878_v24 }
0x152f   :  { %1224 = vtanh.f32 %v888_v26 }
0x1539   :  { %v1225_v27 = vpop.eup %1224 }
0x153a   :  { %891 = vrot.lane.b32.xlu1 %v1225_v27, %s1351_s1 }
0x153e   :  { %903 = vrot.lane.b32.xlu1 %v888_v26, %s1353_s15 }
0x15ac   :  { %v892_v28 = vpop.permute.xlu1 %891 }
0x15ad   :  { %v894_v29 = vmul.f32 %v1223_v21, %v892_v28 }
0x15af   :  { %896 = vrot.lane.b32.xlu0 %v894_v29, %s1352_s14 }
0x15b0   :  { %v904_v30 = vpop.permute.xlu1 %903 }
0x15b1   :  { %906 = vst.msk [vmem:[#allocation3] sm:$0xff] %vm48_vm0, %v904_v30  ;;  %911 = vst.msk [vmem:[#allocation12] sm:$0xff] %vm48_vm0, %v904_v30 }
0x1621   :  { %v897_v31 = vpop.permute.xlu0 %896 }
0x1622   :  { %900 = vst.msk [vmem:[#allocation9 + $0x38] sm:$0xff] %vm48_vm0, %v897_v31  ;;  %901 = vst.msk [vmem:[#allocation2] sm:$0xff] %vm48_vm0, %v897_v31 }
0x1623   :  { %910 = vst.msk [vmem:[#allocation10] sm:$0xff] %vm48_vm0, %v897_v31 }
0x1624   :  { %1281 = shalt.err (!%p1278_p6)
}
0x1625   :  { %s1282_s27 = scalar_lea.hbm %s1577_s3, 128 }
0x1626   :  { %p1283_p7 = scmp.ne.s32.totalorder %s1577_s3, %s1282_s27  ;;  %p1286_p8 = scmp.lt.u32.totalorder %s1282_s27, %s1577_s3 }
0x1628   :  { %p1288_p9 = pnand %p1286_p8, %p1283_p7 }
0x162a   :  { %1291 = shalt.err (!%p1288_p9)
}
0x162b   :  { %933 = dma.vmem_to_hbm [thread:$0]  %s931_s17, 128, %s1577_s3, [#allocation11]  }
0x162c   :  { %s1292_s8 = scalar_lea.vmem %s1518_s19, 1024  ;;  %p1297_p11 = scmp.lt.s32.totalorder %s1518_s19, %s1518_s19 }
0x162d   :  { %p1293_p10 = scmp.ne.s32.totalorder %s1518_s19, %s1292_s8  ;;  %p1298_p12 = scmp.lt.s32.totalorder %s1292_s8, %s1292_s8 }
0x162f   :  { %p1299_p13 = por %p1298_p12, %p1297_p11 }
0x1631   :  { %p1300_p0 = pnand %p1299_p13, %p1293_p10 }
0x1633   :  { %1303 = shalt.err (!%p1300_p0)
}
0x1634   :  { %s1304_s11 = scalar_lea.hbm %s1576_s2, 1024 }
0x1635   :  { %p1305_p1 = scmp.ne.s32.totalorder %s1576_s2, %s1304_s11  ;;  %p1308_p2 = scmp.lt.u32.totalorder %s1304_s11, %s1576_s2 }
0x1637   :  { %p1310_p3 = pnand %p1308_p2, %p1305_p1 }
0x1639   :  { %1313 = shalt.err (!%p1310_p3)
}
0x163a   :  { %923 = dma.vmem_to_hbm [thread:$0]  %s1518_s19, 1024, %s1576_s2, [#allocation6], %s1345_s25, %s1345_s25, %s1346_s26  }
0x163b   :  { %s1314_s15 = scalar_lea.vmem %s1523_s21, 128  ;;  %p1319_p5 = scmp.lt.s32.totalorder %s1523_s21, %s1523_s21 }
0x163c   :  { %p1315_p4 = scmp.ne.s32.totalorder %s1523_s21, %s1314_s15  ;;  %p1320_p6 = scmp.lt.s32.totalorder %s1314_s15, %s1314_s15 }
0x163e   :  { %p1321_p7 = por %p1320_p6, %p1319_p5 }
0x1640   :  { %p1322_p8 = pnand %p1321_p7, %p1315_p4 }
0x1642   :  { %1325 = shalt.err (!%p1322_p8)
}
0x1643   :  { %s1326_s18 = scalar_lea.hbm %s1578_s4, 128 }
0x1644   :  { %p1327_p9 = scmp.ne.s32.totalorder %s1578_s4, %s1326_s18  ;;  %p1330_p10 = scmp.lt.u32.totalorder %s1326_s18, %s1578_s4 }
0x1646   :  { %p1332_p11 = pnand %p1330_p10, %p1327_p9 }
0x1648   :  { %1335 = shalt.err (!%p1332_p11)
}
0x1649   :  { %943 = dma.vmem_to_hbm [thread:$0]  %s1523_s21, 128, %s1578_s4, [#allocation11]  }
0x164a   :  { %1340 = dma.done.wait [#allocation6], 1024  }
0x164b   :  { %1341 = vsyncadd [#allocation6], 4294966272 }
0x164c   :  { %1342 = dma.done.wait [#allocation11], 256  }
0x164d   :  { %1343 = vsyncadd [#allocation11], 4294967040 }
0x164e   :  { %953 = vsyncpa [#allocation5], 1 }
0x164f   :  { %954 = vsyncpa [#allocation8], 1 }
0x1650   :  { %955 = vsyncpa [#allocation6], 1 }
0x1651   :  { %956 = vsyncpa [#allocation11], 1 }

</bundles_post_ra>
